<compile_context>
chip_gen: v7x
topology: tpu7x:2x2x1
jax: 0.10.0
libtpu: 0.0.40
codegen_flags: <defaults>
</compile_context>

<pallas_src>
import math

import jax
import jax.numpy as jnp
from jax.experimental import pallas as pl
from jax.experimental.pallas import tpu as pltpu

# ------------------------- synthetic config (mirrors __init__) ------------------------
HIDDEN_OUT_DIM = 32        # config.rl.hidden_out_dim
STATE_DIM = 8              # config.rl.state_dim
ACTION_DIM = 2             # action_space dim
INIT_LOGSTD = -0.5         # config.rl.init_logstd
SCALE_ACTION = 0.5         # config.rl.scale_action
LIDAR_CHANNELS = 1         # obs_space['aaa_scans'].shape[0]; conv lowering assumes 1
LIDAR_LEN = 64
ACTOR_HIDDEN = 64          # hidden width of ActorMeanNet / CriticNet
IN_FEATURES = HIDDEN_OUT_DIM + STATE_DIM   # 40 (all_frames_history=False, no frame_cat)

# conv geometry (LidarNet)
C1_K, C1_S, C1_P, C1_OUT = 5, 2, 2, 16
C2_K, C2_S, C2_P, C2_OUT = 3, 2, 1, 16
L1 = (LIDAR_LEN + 2 * C1_P - C1_K) // C1_S + 1      # 32
L2 = (L1 + 2 * C2_P - C2_K) // C2_S + 1             # 16

STD = math.exp(INIT_LOGSTD)                               # folded constant
LOGP_CONST = -(INIT_LOGSTD + 0.5 * math.log(2.0 * math.pi))

# packed-input lane layout (one (B, 128) slab)
PK_LIDAR = 0                               # [0, 64)
PK_STATE = PK_LIDAR + LIDAR_LEN            # [64, 72)
PK_ABASE = PK_STATE + STATE_DIM            # [72, 74)
PK_NOISE = PK_ABASE + ACTION_DIM           # [74, 76)
PACK_W = 128

# packed-output lane layout (one (B, 8) slab)
OUT_W = 8                                  # [action(2) | comb(2) | logp(1) | value(1) | pad(2)]


# ------------------------------- fused Pallas kernel ----------------------------------
def _fused_agent_kernel(packed_ref,
                        m1_ref, b1_ref, m2_ref, b2_ref, w3_ref, b3_ref,
                        whs_ref, whl_ref, bh_ref, wo_ref, bo_ref,
                        out_ref):
    bf16, f32 = jnp.bfloat16, jnp.float32

    packed = packed_ref[...]                                      # (TB, 128) f32
    pbf = packed.astype(bf16)                                     # single cast of the input slab

    # LidarNet conv1 (zero-padding + lane-packing folded into m1) -> ReLU
    h1 = jnp.dot(pbf, m1_ref[...], preferred_element_type=f32)
    h1 = jnp.maximum(h1 + b1_ref[...], 0.0)                       # (TB, L1*16) = (TB, 512)
    # conv2 (dense Toeplitz) -> ReLU
    h2 = jnp.dot(h1.astype(bf16), m2_ref[...], preferred_element_type=f32)
    h2 = jnp.maximum(h2 + b2_ref[...], 0.0)                       # (TB, L2*16) = (TB, 256)
    # fc -> ReLU  (modality_encoded)
    lf = jnp.dot(h2.astype(bf16), w3_ref[...], preferred_element_type=f32)
    lf = jnp.maximum(lf + b3_ref[...], 0.0)                       # (TB, 32)

    # features = cat([x_rest, modality_encoded]) folded into split / lane-packed weights:
    # state rows of the packed slab hit whs (zero elsewhere), lidar features hit whl.
    hid = (jnp.dot(pbf, whs_ref[...], preferred_element_type=f32)
           + jnp.dot(lf.astype(bf16), whl_ref[...], preferred_element_type=f32)
           + bh_ref[...])
    hid = jnp.tanh(hid)                                           # (TB, 128): [actor | critic]

    # merged actor_mean / value head (block-diagonal weight)
    head = jnp.dot(hid.astype(bf16), wo_ref[...], preferred_element_type=f32) + bo_ref[...]
    mean = head[:, 0:ACTION_DIM]                                  # (TB, 2)
    value = head[:, ACTION_DIM:ACTION_DIM + 1]                    # (TB, 1)

    a_base = packed[:, PK_ABASE:PK_ABASE + ACTION_DIM]
    noise = packed[:, PK_NOISE:PK_NOISE + ACTION_DIM]

    # Normal rsample + residual combine (combine_before_dist=False) + summed log-prob
    action = mean + STD * noise                                   # rsample
    comb = jnp.clip(action * SCALE_ACTION + a_base, -1.0, 1.0)
    logp = jnp.sum(-0.5 * noise * noise + LOGP_CONST, axis=1, keepdims=True)  # (a-mean)/std == noise

    pad = jnp.zeros((action.shape[0], OUT_W - 2 * ACTION_DIM - 2), f32)
    out_ref[...] = jnp.concatenate([action, comb, logp, value, pad], axis=1)  # one (TB, 8) store


def residual_agent_forward(params, x, noise):
    """Mirrors ResidualAgent.get_action_and_value(x, action=None, done=None)."""
    # --- split_data (all_frames_history=False, aaa_scans.shape[1] == 1) ---
    a_base = x["action_planner"].astype(jnp.float32)              # (B, A)
    x_lidar = x["aaa_scans"].astype(jnp.float32)                  # (B, 1, L); flatten(-1) no-op
    B = x_lidar.shape[0]
    x_rest = x["state"][:, -1].reshape(B, -1).astype(jnp.float32)  # (B, STATE_DIM)
    noise = noise.astype(jnp.float32)

    # pack the four small per-sample inputs into one lane-dense (B, 128) slab (one input DMA)
    packed = jnp.concatenate(
        [x_lidar[:, 0, :], x_rest, a_base, noise,
         jnp.zeros((B, PACK_W - PK_NOISE - ACTION_DIM), jnp.float32)], axis=1)

    # batch tiling: 256 rows/tile (multiple of v5e 128 and v6e/v7x 256 MXU M) for large B;
    # small B rounds up to a multiple of 8 so the single tile stays (8,128)-aligned.
    TILE_B = 256 if B > 256 else max(8, 8 * ((B + 7) // 8))
    n_tiles = (B + TILE_B - 1) // TILE_B
    B_pad = n_tiles * TILE_B
    if B_pad != B:                                                # pad ragged tail on the host
        packed = jnp.pad(packed, ((0, B_pad - B), (0, 0)))

    p = params
    weight_args = (p["m1"], p["b1"], p["m2"], p["b2"], p["w3"], p["b3"],
                   p["wh_state"], p["wh_lidar"], p["bh"], p["w_out"], p["b_out"])

    def _weight_spec(arr):
        # constant index map -> weights stay VMEM-resident across batch tiles
        return pl.BlockSpec(arr.shape, lambda b: (0, 0))

    flops = 2 * B_pad * (
        PACK_W * (L1 * C1_OUT)                    # conv1 (packed K)
        + (L1 * C1_OUT) * (L2 * C2_OUT)           # conv2
        + (L2 * C2_OUT) * HIDDEN_OUT_DIM          # fc
        + PACK_W * (2 * ACTOR_HIDDEN)             # state -> hidden (packed)
        + HIDDEN_OUT_DIM * (2 * ACTOR_HIDDEN)     # lidar feat -> hidden
        + (2 * ACTOR_HIDDEN) * (ACTION_DIM + 1))  # merged heads
    weight_bytes = sum(int(v.size) * v.dtype.itemsize for v in weight_args)
    cost = pl.CostEstimate(
        flops=flops,
        transcendentals=B_pad * 2 * ACTOR_HIDDEN,                 # tanh
        bytes_accessed=B_pad * PACK_W * 4 + B_pad * OUT_W * 4 + weight_bytes)

    out = pl.pallas_call(
        _fused_agent_kernel,
        out_shape=jax.ShapeDtypeStruct((B_pad, OUT_W), jnp.float32),
        grid=(n_tiles,),
        in_specs=[pl.BlockSpec((TILE_B, PACK_W), lambda b: (b, 0))]
                 + [_weight_spec(w) for w in weight_args],
        out_specs=pl.BlockSpec((TILE_B, OUT_W), lambda b: (b, 0)),
        compiler_params=pltpu.CompilerParams(dimension_semantics=("parallel",)),
        cost_estimate=cost,
    )(packed, *weight_args)

    out = out[:B]
    action = out[:, 0:ACTION_DIM]
    action_combined = out[:, ACTION_DIM:2 * ACTION_DIM]
    log_prob = out[:, 2 * ACTION_DIM]                             # (B,)
    value = out[:, 2 * ACTION_DIM + 1:2 * ACTION_DIM + 2]         # (B, 1)
    # reference computes entropy = -log_prob.mean() but returns zeros_like(log_prob)
    return action, action_combined, log_prob, jnp.zeros_like(log_prob), value


# ----------------------- parameter synthesis + conv->dense lowering --------------------
def _conv1_to_dense_packed(w1, b1):
    """w1: (C1_K, C1_OUT), C_in==1 -> dense (PACK_W, L1*C1_OUT) Toeplitz matrix.
    Conv zero-padding is folded in (out-of-range taps are simply absent); rows outside the
    lidar lanes of the packed input are zero."""
    j = jnp.arange(LIDAR_LEN)[:, None, None]
    l = jnp.arange(L1)[None, :, None]
    k = jnp.arange(C1_K)[None, None, :]
    sel = (j == C1_S * l + k - C1_P).astype(jnp.float32)          # (64, 32, 5)
    m1 = jnp.einsum("jlk,kc->jlc", sel, w1).reshape(LIDAR_LEN, L1 * C1_OUT)
    m1p = jnp.zeros((PACK_W, L1 * C1_OUT), jnp.float32)
    m1p = m1p.at[PK_LIDAR:PK_LIDAR + LIDAR_LEN].set(m1)
    b1f = jnp.tile(b1, (L1,)).reshape(1, L1 * C1_OUT)
    return m1p, b1f


def _conv2_to_dense(w2, b2):
    """w2: (C2_K, C1_OUT, C2_OUT) -> dense (L1*C1_OUT, L2*C2_OUT) Toeplitz matrix.
    Rows/cols are spatial-major (l*16 + channel); zero padding == absent taps."""
    l1 = jnp.arange(L1)[:, None, None]
    l2 = jnp.arange(L2)[None, :, None]
    k = jnp.arange(C2_K)[None, None, :]
    sel = (l1 == C2_S * l2 + k - C2_P).astype(jnp.float32)        # (32, 16, 3)
    m2 = jnp.einsum("LMk,kco->LcMo", sel, w2).reshape(L1 * C1_OUT, L2 * C2_OUT)
    b2f = jnp.tile(b2, (L2,)).reshape(1, L2 * C2_OUT)
    return m2, b2f


def init_params(key):
    ks = jax.random.split(key, 8)

    def w(k_, shape, scale=0.1):
        return scale * jax.random.normal(k_, shape, jnp.float32)

    # LidarNet (modality_encoder): Conv1d(1->16,k5,s2,p2) -> Conv1d(16->16,k3,s2,p1) -> Linear
    conv1_w = w(ks[0], (C1_K, C1_OUT))
    conv1_b = jnp.zeros((C1_OUT,), jnp.float32)
    conv2_w = w(ks[1], (C2_K, C1_OUT, C2_OUT))
    conv2_b = jnp.zeros((C2_OUT,), jnp.float32)
    m1p, b1f = _conv1_to_dense_packed(conv1_w, conv1_b)
    m2, b2f = _conv2_to_dense(conv2_w, conv2_b)
    fc_w = w(ks[2], (L2 * C2_OUT, HIDDEN_OUT_DIM))       # consumes (l, c)-ordered flatten
    fc_b = jnp.zeros((1, HIDDEN_OUT_DIM), jnp.float32)

    # ActorMeanNet / CriticNet on features = [x_rest | modality_encoded] (dim 40)
    actor_w1 = w(ks[3], (IN_FEATURES, ACTOR_HIDDEN))
    actor_b1 = jnp.zeros((ACTOR_HIDDEN,), jnp.float32)
    actor_w2 = w(ks[4], (ACTOR_HIDDEN, ACTION_DIM))
    actor_b2 = jnp.zeros((ACTION_DIM,), jnp.float32)
    critic_w1 = w(ks[5], (IN_FEATURES, ACTOR_HIDDEN))
    critic_b1 = jnp.zeros((ACTOR_HIDDEN,), jnp.float32)
    critic_w2 = w(ks[6], (ACTOR_HIDDEN, 1))
    critic_b2 = jnp.zeros((1,), jnp.float32)

    # merge actor/critic hidden layers -> one lane-dense 128-wide tanh output, split by
    # feature source.  The state part is lane-packed into a (128, 128) matrix so the kernel
    # multiplies the packed input slab directly (no concat / slicing of matmul operands).
    wh = jnp.concatenate([actor_w1, critic_w1], axis=1)           # (40, 128)
    bh = jnp.concatenate([actor_b1, critic_b1]).reshape(1, -1)    # (1, 128)
    whs_pack = jnp.zeros((PACK_W, 2 * ACTOR_HIDDEN), jnp.float32)
    whs_pack = whs_pack.at[PK_STATE:PK_STATE + STATE_DIM].set(wh[:STATE_DIM])
    wh_lidar = wh[STATE_DIM:]                                     # (32, 128)

    # merge output heads block-diagonally -> one (128, 3) matmul (cols: mean0, mean1, value)
    w_out = jnp.zeros((2 * ACTOR_HIDDEN, ACTION_DIM + 1), jnp.float32)
    w_out = w_out.at[:ACTOR_HIDDEN, :ACTION_DIM].set(actor_w2)
    w_out = w_out.at[ACTOR_HIDDEN:, ACTION_DIM:].set(critic_w2)
    b_out = jnp.concatenate([actor_b2, critic_b2]).reshape(1, -1)  # (1, 3)

    bf16 = jnp.bfloat16
    return dict(
        m1=m1p.astype(bf16), b1=b1f,
        m2=m2.astype(bf16), b2=b2f,
        w3=fc_w.astype(bf16), b3=fc_b,
        wh_state=whs_pack.astype(bf16),
        wh_lidar=wh_lidar.astype(bf16),
        bh=bh,
        w_out=w_out.astype(bf16), b_out=b_out,
    )


# ------------------------------------ main ----------------------------------------------
if __name__ == "__main__":
    key = jax.random.PRNGKey(0)
    k1, k2, k3, k4 = jax.random.split(key, 4)
    B = 2
    x = {
        "aaa_scans": jax.random.uniform(k1, (B, LIDAR_CHANNELS, LIDAR_LEN), jnp.float32),
        "state": jax.random.normal(k2, (B, 1, STATE_DIM), jnp.float32),
        "action_planner": jax.random.uniform(k3, (B, ACTION_DIM), jnp.float32,
                                             minval=-0.5, maxval=0.5),
    }
    noise = jax.random.normal(k4, (B, ACTION_DIM), jnp.float32)   # N(0,1) eps for rsample
    params = init_params(jax.random.PRNGKey(42))

    fwd = jax.jit(residual_agent_forward)
    action, action_combined, log_prob, zeros_lp, value = fwd(params, x, noise)
    jax.block_until_ready((action, action_combined, log_prob, zeros_lp, value))

    assert action.shape == (B, ACTION_DIM)
    assert action_combined.shape == (B, ACTION_DIM)
    assert log_prob.shape == (B,)
    assert zeros_lp.shape == (B,)
    assert value.shape == (B, 1)
    assert bool(jnp.all(jnp.isfinite(action)))
    assert bool(jnp.all(jnp.isfinite(action_combined)))
    assert bool(jnp.all(jnp.isfinite(log_prob)))
    assert bool(jnp.all(jnp.isfinite(value)))
    assert bool(jnp.all(jnp.abs(action_combined) <= 1.0))
    print("KERNEL_OK")
</pallas_src>

<mosaic_0001>
module attributes {stable_mosaic.version = 11 : i64} {
  func.func @_fused_agent_kernel(%arg0: i32, %arg1: memref<8x128xf32, #tpu.memory_space<vmem>>, %arg2: memref<128x512xbf16, #tpu.memory_space<vmem>>, %arg3: memref<1x512xf32, #tpu.memory_space<vmem>>, %arg4: memref<512x256xbf16, #tpu.memory_space<vmem>>, %arg5: memref<1x256xf32, #tpu.memory_space<vmem>>, %arg6: memref<256x32xbf16, #tpu.memory_space<vmem>>, %arg7: memref<1x32xf32, #tpu.memory_space<vmem>>, %arg8: memref<128x128xbf16, #tpu.memory_space<vmem>>, %arg9: memref<32x128xbf16, #tpu.memory_space<vmem>>, %arg10: memref<1x128xf32, #tpu.memory_space<vmem>>, %arg11: memref<128x3xbf16, #tpu.memory_space<vmem>>, %arg12: memref<1x3xf32, #tpu.memory_space<vmem>>, %arg13: memref<8x8xf32, #tpu.memory_space<vmem>>) attributes {dimension_semantics = [#tpu.dimension_semantics<parallel>], iteration_bounds = array<i64: 1>, scalar_prefetch = 0 : i64, scratch_operands = 0 : i64, tpu.core_type = #tpu.core_type<tc>, window_params = [{transform_indices = @transform_0, window_bounds = array<i64: 8, 128>}, {pipeline_mode = #tpu.pipeline_mode<synchronous>, transform_indices = @transform_1, window_bounds = array<i64: 128, 512>}, {pipeline_mode = #tpu.pipeline_mode<synchronous>, transform_indices = @transform_2, window_bounds = array<i64: 1, 512>}, {pipeline_mode = #tpu.pipeline_mode<synchronous>, transform_indices = @transform_3, window_bounds = array<i64: 512, 256>}, {pipeline_mode = #tpu.pipeline_mode<synchronous>, transform_indices = @transform_4, window_bounds = array<i64: 1, 256>}, {pipeline_mode = #tpu.pipeline_mode<synchronous>, transform_indices = @transform_5, window_bounds = array<i64: 256, 32>}, {pipeline_mode = #tpu.pipeline_mode<synchronous>, transform_indices = @transform_6, window_bounds = array<i64: 1, 32>}, {pipeline_mode = #tpu.pipeline_mode<synchronous>, transform_indices = @transform_7, window_bounds = array<i64: 128, 128>}, {pipeline_mode = #tpu.pipeline_mode<synchronous>, transform_indices = @transform_8, window_bounds = array<i64: 32, 128>}, {pipeline_mode = #tpu.pipeline_mode<synchronous>, transform_indices = @transform_9, window_bounds = array<i64: 1, 128>}, {pipeline_mode = #tpu.pipeline_mode<synchronous>, transform_indices = @transform_10, window_bounds = array<i64: 128, 3>}, {pipeline_mode = #tpu.pipeline_mode<synchronous>, transform_indices = @transform_11, window_bounds = array<i64: 1, 3>}, {transform_indices = @transform_12, window_bounds = array<i64: 8, 8>}]} {
    %c0 = arith.constant 0 : index
    %c0_0 = arith.constant 0 : index
    %0 = vector.load %arg1[%c0, %c0_0] : memref<8x128xf32, #tpu.memory_space<vmem>>, vector<8x128xf32>
    %1 = arith.truncf %0 : vector<8x128xf32> to vector<8x128xbf16>
    %c0_1 = arith.constant 0 : index
    %c0_2 = arith.constant 0 : index
    %2 = vector.load %arg2[%c0_1, %c0_2] : memref<128x512xbf16, #tpu.memory_space<vmem>>, vector<128x512xbf16>
    %cst = arith.constant dense<0.000000e+00> : vector<8x512xf32>
    %3 = tpu.matmul %1, %2, %cst {dimension_numbers = #tpu.dot_dimension_numbers<[1], [0], [0], [1], [0, 0, 1, 1], [], []>} : vector<8x128xbf16>, vector<128x512xbf16>, vector<8x512xf32> -> vector<8x512xf32>
    %c0_3 = arith.constant 0 : index
    %c0_4 = arith.constant 0 : index
    %4 = vector.load %arg3[%c0_3, %c0_4] : memref<1x512xf32, #tpu.memory_space<vmem>>, vector<1x512xf32>
    %5 = vector.broadcast %4 : vector<1x512xf32> to vector<8x512xf32>
    %6 = arith.addf %3, %5 : vector<8x512xf32>
    %cst_5 = arith.constant 0.000000e+00 : f32
    %7 = vector.broadcast %cst_5 : f32 to vector<8x512xf32>
    %8 = arith.maximumf %6, %7 : vector<8x512xf32>
    %9 = arith.truncf %8 : vector<8x512xf32> to vector<8x512xbf16>
    %c0_6 = arith.constant 0 : index
    %c0_7 = arith.constant 0 : index
    %10 = vector.load %arg4[%c0_6, %c0_7] : memref<512x256xbf16, #tpu.memory_space<vmem>>, vector<512x256xbf16>
    %cst_8 = arith.constant dense<0.000000e+00> : vector<8x256xf32>
    %11 = tpu.matmul %9, %10, %cst_8 {dimension_numbers = #tpu.dot_dimension_numbers<[1], [0], [0], [1], [0, 0, 1, 1], [], []>} : vector<8x512xbf16>, vector<512x256xbf16>, vector<8x256xf32> -> vector<8x256xf32>
    %c0_9 = arith.constant 0 : index
    %c0_10 = arith.constant 0 : index
    %12 = vector.load %arg5[%c0_9, %c0_10] : memref<1x256xf32, #tpu.memory_space<vmem>>, vector<1x256xf32>
    %13 = vector.broadcast %12 : vector<1x256xf32> to vector<8x256xf32>
    %14 = arith.addf %11, %13 : vector<8x256xf32>
    %cst_11 = arith.constant 0.000000e+00 : f32
    %15 = vector.broadcast %cst_11 : f32 to vector<8x256xf32>
    %16 = arith.maximumf %14, %15 : vector<8x256xf32>
    %17 = arith.truncf %16 : vector<8x256xf32> to vector<8x256xbf16>
    %c0_12 = arith.constant 0 : index
    %c0_13 = arith.constant 0 : index
    %18 = vector.load %arg6[%c0_12, %c0_13] : memref<256x32xbf16, #tpu.memory_space<vmem>>, vector<256x32xbf16>
    %cst_14 = arith.constant dense<0.000000e+00> : vector<8x32xf32>
    %19 = tpu.matmul %17, %18, %cst_14 {dimension_numbers = #tpu.dot_dimension_numbers<[1], [0], [0], [1], [0, 0, 1, 1], [], []>} : vector<8x256xbf16>, vector<256x32xbf16>, vector<8x32xf32> -> vector<8x32xf32>
    %c0_15 = arith.constant 0 : index
    %c0_16 = arith.constant 0 : index
    %20 = vector.load %arg7[%c0_15, %c0_16] : memref<1x32xf32, #tpu.memory_space<vmem>>, vector<1x32xf32>
    %21 = vector.broadcast %20 : vector<1x32xf32> to vector<8x32xf32>
    %22 = arith.addf %19, %21 : vector<8x32xf32>
    %cst_17 = arith.constant 0.000000e+00 : f32
    %23 = vector.broadcast %cst_17 : f32 to vector<8x32xf32>
    %24 = arith.maximumf %22, %23 : vector<8x32xf32>
    %c0_18 = arith.constant 0 : index
    %c0_19 = arith.constant 0 : index
    %25 = vector.load %arg8[%c0_18, %c0_19] : memref<128x128xbf16, #tpu.memory_space<vmem>>, vector<128x128xbf16>
    %cst_20 = arith.constant dense<0.000000e+00> : vector<8x128xf32>
    %26 = tpu.matmul %1, %25, %cst_20 {dimension_numbers = #tpu.dot_dimension_numbers<[1], [0], [0], [1], [0, 0, 1, 1], [], []>} : vector<8x128xbf16>, vector<128x128xbf16>, vector<8x128xf32> -> vector<8x128xf32>
    %27 = arith.truncf %24 : vector<8x32xf32> to vector<8x32xbf16>
    %c0_21 = arith.constant 0 : index
    %c0_22 = arith.constant 0 : index
    %28 = vector.load %arg9[%c0_21, %c0_22] : memref<32x128xbf16, #tpu.memory_space<vmem>>, vector<32x128xbf16>
    %cst_23 = arith.constant dense<0.000000e+00> : vector<8x128xf32>
    %29 = tpu.matmul %27, %28, %cst_23 {dimension_numbers = #tpu.dot_dimension_numbers<[1], [0], [0], [1], [0, 0, 1, 1], [], []>} : vector<8x32xbf16>, vector<32x128xbf16>, vector<8x128xf32> -> vector<8x128xf32>
    %30 = arith.addf %26, %29 : vector<8x128xf32>
    %c0_24 = arith.constant 0 : index
    %c0_25 = arith.constant 0 : index
    %31 = vector.load %arg10[%c0_24, %c0_25] : memref<1x128xf32, #tpu.memory_space<vmem>>, vector<1x128xf32>
    %32 = vector.broadcast %31 : vector<1x128xf32> to vector<8x128xf32>
    %33 = arith.addf %30, %32 : vector<8x128xf32>
    %34 = math.tanh %33 : vector<8x128xf32>
    %35 = arith.truncf %34 : vector<8x128xf32> to vector<8x128xbf16>
    %c0_26 = arith.constant 0 : index
    %c0_27 = arith.constant 0 : index
    %36 = vector.load %arg11[%c0_26, %c0_27] : memref<128x3xbf16, #tpu.memory_space<vmem>>, vector<128x3xbf16>
    %cst_28 = arith.constant dense<0.000000e+00> : vector<8x3xf32>
    %37 = tpu.matmul %35, %36, %cst_28 {dimension_numbers = #tpu.dot_dimension_numbers<[1], [0], [0], [1], [0, 0, 1, 1], [], []>} : vector<8x128xbf16>, vector<128x3xbf16>, vector<8x3xf32> -> vector<8x3xf32>
    %c0_29 = arith.constant 0 : index
    %c0_30 = arith.constant 0 : index
    %38 = vector.load %arg12[%c0_29, %c0_30] : memref<1x3xf32, #tpu.memory_space<vmem>>, vector<1x3xf32>
    %39 = vector.broadcast %38 : vector<1x3xf32> to vector<8x3xf32>
    %40 = arith.addf %37, %39 : vector<8x3xf32>
    %41 = vector.extract_strided_slice %40 {offsets = [0, 0], sizes = [8, 2], strides = [1, 1]} : vector<8x3xf32> to vector<8x2xf32>
    %42 = vector.extract_strided_slice %40 {offsets = [0, 2], sizes = [8, 1], strides = [1, 1]} : vector<8x3xf32> to vector<8x1xf32>
    %43 = vector.extract_strided_slice %0 {offsets = [0, 72], sizes = [8, 2], strides = [1, 1]} : vector<8x128xf32> to vector<8x2xf32>
    %44 = vector.extract_strided_slice %0 {offsets = [0, 74], sizes = [8, 2], strides = [1, 1]} : vector<8x128xf32> to vector<8x2xf32>
    %cst_31 = arith.constant 0.606530666 : f32
    %45 = vector.broadcast %cst_31 : f32 to vector<8x2xf32>
    %46 = arith.mulf %45, %44 : vector<8x2xf32>
    %47 = arith.addf %41, %46 : vector<8x2xf32>
    %cst_32 = arith.constant 5.000000e-01 : f32
    %48 = vector.broadcast %cst_32 : f32 to vector<8x2xf32>
    %49 = arith.mulf %47, %48 : vector<8x2xf32>
    %50 = arith.addf %49, %43 : vector<8x2xf32>
    %cst_33 = arith.constant -1.000000e+00 : f32
    %cst_34 = arith.constant 1.000000e+00 : f32
    %51 = vector.broadcast %cst_33 : f32 to vector<8x2xf32>
    %52 = arith.maximumf %51, %50 : vector<8x2xf32>
    %53 = vector.broadcast %cst_34 : f32 to vector<8x2xf32>
    %54 = arith.minimumf %53, %52 : vector<8x2xf32>
    %cst_35 = arith.constant -5.000000e-01 : f32
    %55 = vector.broadcast %cst_35 : f32 to vector<8x2xf32>
    %56 = arith.mulf %55, %44 : vector<8x2xf32>
    %57 = arith.mulf %56, %44 : vector<8x2xf32>
    %cst_36 = arith.constant -0.418938547 : f32
    %58 = vector.broadcast %cst_36 : f32 to vector<8x2xf32>
    %59 = arith.addf %57, %58 : vector<8x2xf32>
    %cst_37 = arith.constant dense<0.000000e+00> : vector<8xf32>
    %60 = vector.multi_reduction <add>, %59, %cst_37 [1] : vector<8x2xf32> to vector<8xf32>
    %61 = vector.shape_cast %60 : vector<8xf32> to vector<8x1xf32>
    %cst_38 = arith.constant 0.000000e+00 : f32
    %62 = vector.broadcast %cst_38 : f32 to vector<8x2xf32>
    %63 = tpu.concatenate %47, %54, %61, %42, %62 in 1 : vector<8x2xf32>, vector<8x2xf32>, vector<8x1xf32>, vector<8x1xf32>, vector<8x2xf32> -> vector<8x8xf32>
    %c0_39 = arith.constant 0 : index
    %c0_40 = arith.constant 0 : index
    %64 = vector.load %arg13[%c0_39, %c0_40] : memref<8x8xf32, #tpu.memory_space<vmem>>, vector<8x8xf32>
    tpu.vector_store %arg13[%c0_39, %c0_40], %63 {strides = array<i32>} : memref<8x8xf32, #tpu.memory_space<vmem>>, vector<8x8xf32>,
    return
  }
  func.func @transform_0(%arg0: i32) -> (i32, i32) {
    %c0_i32 = arith.constant 0 : i32
    %c0_i32_0 = arith.constant 0 : i32
    return %arg0, %c0_i32 : i32, i32
  }
  func.func @transform_1(%arg0: i32) -> (i32, i32) {
    %c0_i32 = arith.constant 0 : i32
    %c0_i32_0 = arith.constant 0 : i32
    %c0_i32_1 = arith.constant 0 : i32
    return %c0_i32, %c0_i32_0 : i32, i32
  }
  func.func @transform_2(%arg0: i32) -> (i32, i32) {
    %c0_i32 = arith.constant 0 : i32
    %c0_i32_0 = arith.constant 0 : i32
    %c0_i32_1 = arith.constant 0 : i32
    return %c0_i32, %c0_i32_0 : i32, i32
  }
  func.func @transform_3(%arg0: i32) -> (i32, i32) {
    %c0_i32 = arith.constant 0 : i32
    %c0_i32_0 = arith.constant 0 : i32
    %c0_i32_1 = arith.constant 0 : i32
    return %c0_i32, %c0_i32_0 : i32, i32
  }
  func.func @transform_4(%arg0: i32) -> (i32, i32) {
    %c0_i32 = arith.constant 0 : i32
    %c0_i32_0 = arith.constant 0 : i32
    %c0_i32_1 = arith.constant 0 : i32
    return %c0_i32, %c0_i32_0 : i32, i32
  }
  func.func @transform_5(%arg0: i32) -> (i32, i32) {
    %c0_i32 = arith.constant 0 : i32
    %c0_i32_0 = arith.constant 0 : i32
    %c0_i32_1 = arith.constant 0 : i32
    return %c0_i32, %c0_i32_0 : i32, i32
  }
  func.func @transform_6(%arg0: i32) -> (i32, i32) {
    %c0_i32 = arith.constant 0 : i32
    %c0_i32_0 = arith.constant 0 : i32
    %c0_i32_1 = arith.constant 0 : i32
    return %c0_i32, %c0_i32_0 : i32, i32
  }
  func.func @transform_7(%arg0: i32) -> (i32, i32) {
    %c0_i32 = arith.constant 0 : i32
    %c0_i32_0 = arith.constant 0 : i32
    %c0_i32_1 = arith.constant 0 : i32
    return %c0_i32, %c0_i32_0 : i32, i32
  }
  func.func @transform_8(%arg0: i32) -> (i32, i32) {
    %c0_i32 = arith.constant 0 : i32
    %c0_i32_0 = arith.constant 0 : i32
    %c0_i32_1 = arith.constant 0 : i32
    return %c0_i32, %c0_i32_0 : i32, i32
  }
  func.func @transform_9(%arg0: i32) -> (i32, i32) {
    %c0_i32 = arith.constant 0 : i32
    %c0_i32_0 = arith.constant 0 : i32
    %c0_i32_1 = arith.constant 0 : i32
    return %c0_i32, %c0_i32_0 : i32, i32
  }
  func.func @transform_10(%arg0: i32) -> (i32, i32) {
    %c0_i32 = arith.constant 0 : i32
    %c0_i32_0 = arith.constant 0 : i32
    %c0_i32_1 = arith.constant 0 : i32
    return %c0_i32, %c0_i32_0 : i32, i32
  }
  func.func @transform_11(%arg0: i32) -> (i32, i32) {
    %c0_i32 = arith.constant 0 : i32
    %c0_i32_0 = arith.constant 0 : i32
    %c0_i32_1 = arith.constant 0 : i32
    return %c0_i32, %c0_i32_0 : i32, i32
  }
  func.func @transform_12(%arg0: i32) -> (i32, i32) {
    %c0_i32 = arith.constant 0 : i32
    %c0_i32_0 = arith.constant 0 : i32
    return %arg0, %c0_i32 : i32, i32
  }
}

</mosaic_0001>

<bundles_post_ra>
// kernel: residual_agent_forward.1
= control target key start
LH: loop header
LB: loop body
LE: loop exit
PB: predicated region body
PF: predicated region fallthrough
CT: control target
= control target key end

     0   :  { %17 = vsyncpa [#allocation3], 0  ;;  %s2246_s0 = inlined_call_operand.vmem [shape: f32[8,128], index: 0, kind: input, shape index: {}]   ;;  %s2247_s1 = inlined_call_operand.vmem [shape: bf16[128,512], index: 1, kind: input, shape index: {}]   ;;  %s2248_s2 = inlined_call_operand.vmem [shape: f32[1,512], index: 2, kind: input, shape index: {}]   ;;  %s2249_s3 = inlined_call_operand.hbm [shape: bf16[512,256], index: 3, kind: input, shape index: {}]   ;;  %s2250_s4 = inlined_call_operand.vmem [shape: f32[1,256], index: 4, kind: input, shape index: {}]   ;;  %s2251_s5 = inlined_call_operand.vmem [shape: bf16[256,32], index: 5, kind: input, shape index: {}]   ;;  %s2252_s6 = inlined_call_operand.vmem [shape: f32[1,32], index: 6, kind: input, shape index: {}]   ;;  %s2253_s7 = inlined_call_operand.hbm [shape: bf16[128,128], index: 7, kind: input, shape index: {}]   ;;  %s2254_s8 = inlined_call_operand.hbm [shape: bf16[32,128], index: 8, kind: input, shape index: {}]   ;;  %s2255_s9 = inlined_call_operand.vmem [shape: f32[1,128], index: 9, kind: input, shape index: {}]   ;;  %s2256_s10 = inlined_call_operand.vmem [shape: bf16[128,3], index: 10, kind: input, shape index: {}]   ;;  %s2257_s11 = inlined_call_operand.vmem [shape: f32[1,3], index: 11, kind: input, shape index: {}]   ;;  %s2258_s12 = inlined_call_operand.vmem [shape: f32[8,8], index: 12, kind: output, shape index: {}]  }
   0x1   :  { %18 = vsyncpa [#allocation5], 0  ;;  %s1877_s21 = smov [#allocation4]   ;;  %s1807_s25 = scalar_lea.hbm %s2253_s7, 1024 }
   0x2   :  { %s48_s22 = sshll.u32 %s1877_s21, 4  ;;  %p1808_p0 = scmp.ne.s32.totalorder %s2253_s7, %s1807_s25  ;;  %s49_s22 = int_to_ptr.vmem [resolvable:$true] %s48_s22 }
   0x3   :  { %p1811_p1 = scmp.lt.u32.totalorder %s1807_s25, %s2253_s7 }
   0x5   :  { %p1813_p2 = pnand %p1811_p1, %p1808_p0 }
   0x7   :  { %1816 = shalt.err (!%p1813_p2)
}
   0x8   :  { %s1817_s30 = scalar_lea.vmem %s49_s22, 1024  ;;  %p1822_p4 = scmp.lt.s32.totalorder %s49_s22, %s49_s22 }
   0x9   :  { %p1818_p3 = scmp.ne.s32.totalorder %s49_s22, %s1817_s30  ;;  %p1823_p5 = scmp.lt.s32.totalorder %s1817_s30, %s1817_s30 }
   0xb   :  { %p1824_p6 = por %p1823_p5, %p1822_p4 }
   0xd   :  { %p1825_p7 = pnand %p1824_p6, %p1818_p3 }
   0xf   :  { %1828 = shalt.err (!%p1825_p7)
}
  0x10   :  { %s1878_s13 = smov 64   ;;  %s1879_s14 = smov 4  }
  0x11   :  { %54 = dma.hbm_to_vmem [thread:$0]  %s2253_s7, 1024, %s49_s22, [#allocation5], %s1878_s13, %s1878_s13, %s1879_s14  }
  0x12   :  { %s1880_s17 = smov [#allocation2]   ;;  %s1829_s21 = scalar_lea.hbm %s2249_s3, 8192 }
  0x13   :  { %s30_s18 = sshll.u32 %s1880_s17, 4  ;;  %p1830_p8 = scmp.ne.s32.totalorder %s2249_s3, %s1829_s21  ;;  %s31_s18 = int_to_ptr.vmem [resolvable:$true] %s30_s18 }
  0x14   :  { %p1833_p9 = scmp.lt.u32.totalorder %s1829_s21, %s2249_s3 }
  0x16   :  { %p1835_p10 = pnand %p1833_p9, %p1830_p8 }
  0x18   :  { %1838 = shalt.err (!%p1835_p10)
}
  0x19   :  { %s1839_s27 = scalar_lea.vmem %s31_s18, 8192  ;;  %p1844_p12 = scmp.lt.s32.totalorder %s31_s18, %s31_s18 }
  0x1a   :  { %p1840_p11 = scmp.ne.s32.totalorder %s31_s18, %s1839_s27  ;;  %p1845_p13 = scmp.lt.s32.totalorder %s1839_s27, %s1839_s27 }
  0x1c   :  { %p1846_p0 = por %p1845_p13, %p1844_p12 }
  0x1e   :  { %p1847_p1 = pnand %p1846_p0, %p1840_p11 }
  0x20   :  { %1850 = shalt.err (!%p1847_p1)
}
  0x21   :  { %s1881_s7 = smov 128   ;;  %s1882_s22 = smov 8  }
  0x22   :  { %36 = dma.hbm_to_vmem [thread:$0]  %s2249_s3, 8192, %s31_s18, [#allocation3], %s1881_s7, %s1881_s7, %s1882_s22  }
  0x23   :  { %s1883_s30 = smov [#allocation6]   ;;  %s1851_s19 = scalar_lea.hbm %s2254_s8, 256 }
  0x24   :  { %s60_s15 = sshll.u32 %s1883_s30, 4  ;;  %p1852_p2 = scmp.ne.s32.totalorder %s2254_s8, %s1851_s19  ;;  %s61_s15 = int_to_ptr.vmem [resolvable:$true] %s60_s15 }
  0x25   :  { %p1855_p3 = scmp.lt.u32.totalorder %s1851_s19, %s2254_s8 }
  0x27   :  { %p1857_p4 = pnand %p1855_p3, %p1852_p2 }
  0x29   :  { %1860 = shalt.err (!%p1857_p4)
}
  0x2a   :  { %s1861_s25 = scalar_lea.vmem %s61_s15, 256  ;;  %p1866_p6 = scmp.lt.s32.totalorder %s61_s15, %s61_s15 }
  0x2b   :  { %p1862_p5 = scmp.ne.s32.totalorder %s61_s15, %s1861_s25  ;;  %p1867_p7 = scmp.lt.s32.totalorder %s1861_s25, %s1861_s25 }
  0x2d   :  { %p1868_p8 = por %p1867_p7, %p1866_p6 }
  0x2f   :  { %p1869_p9 = pnand %p1868_p8, %p1862_p5 }
  0x31   :  { %1872 = shalt.err (!%p1869_p9)
}
  0x32   :  { %66 = dma.hbm_to_vmem [thread:$0]  %s2254_s8, 256, %s61_s15, [#allocation5], %s1878_s13, %s1878_s13, %s1879_s14  }
  0x33   :  { %1873 = dma.done.wait [#allocation3], 8192  }
  0x34   :  { %1874 = vsyncadd [#allocation3], 4294959104 }
  0x35   :  { %1875 = dma.done.wait [#allocation5], 1280  }
  0x36   :  { %1876 = vsyncadd [#allocation5], 4294966016  ;;  %v1884_v0 = vmov 0   ;;  %v1627_v1 = vld [vmem:[%s2247_s1 + $0x4] ss:$16 sps:$4 sm:$0xff]   ;;  %vm1886_vm0 = vmmov 0  }
  0x37   :  { %331 = vmatprep.mubr.bf16.mxu0 %v1884_v0  ;;  %372 = vmatprep.mubr.bf16.mxu1 %v1884_v0  ;;  %v1629_v2 = vld [vmem:[%s2247_s1] ss:$16 sps:$4 sm:$0xff]   ;;  %v1630_v3 = vld [vmem:[%s2247_s1 + $0x24] ss:$16 sps:$4 sm:$0xff]   ;;  %v1651_v10 = vld [vmem:[%s2247_s1 + $0xc] ss:$16 sps:$4 sm:$0xff]  }
  0x38   :  { %299 = vmatprep.subr.bf16.mxu0 %v1627_v1  ;;  %v1632_v4 = vld [vmem:[%s2247_s1 + $0x20] ss:$16 sps:$4 sm:$0xff]   ;;  %v1633_v5 = vld [vmem:[%s2247_s1 + $0x44] ss:$16 sps:$4 sm:$0xff]   ;;  %v1653_v11 = vld [vmem:[%s2247_s1 + $0x8] ss:$16 sps:$4 sm:$0xff]   ;;  %340 = vmatprep.subr.bf16.mxu1 %v1651_v10 }
  0x39   :  { %300 = vmatpush1.bf16.msra.mxu0 %v1629_v2  ;;  %v1635_v6 = vld [vmem:[%s2247_s1 + $0x40] ss:$16 sps:$4 sm:$0xff]   ;;  %v1636_v7 = vld [vmem:[%s2247_s1 + $0x64] ss:$16 sps:$4 sm:$0xff]   ;;  %v1654_v12 = vld [vmem:[%s2247_s1 + $0x2c] ss:$16 sps:$4 sm:$0xff]   ;;  %341 = vmatpush1.bf16.msra.mxu1 %v1653_v11 }
  0x3a   :  { %301 = vmatprep.subr.bf16.mxu0 %v1630_v3  ;;  %v1638_v8 = vld [vmem:[%s2247_s1 + $0x60] ss:$16 sps:$4 sm:$0xff]   ;;  %v1639_v9 = vld [vmem:[%s2247_s1 + $0x84] ss:$16 sps:$4 sm:$0xff]   ;;  %v1656_v14 = vld [vmem:[%s2247_s1 + $0x28] ss:$16 sps:$4 sm:$0xff]   ;;  %342 = vmatprep.subr.bf16.mxu1 %v1654_v12 }
  0x3b   :  { %v1641_v13 = vld [vmem:[%s2247_s1 + $0x80] ss:$16 sps:$4 sm:$0xff]   ;;  %v1657_v15 = vld [vmem:[%s2247_s1 + $0x4c] ss:$16 sps:$4 sm:$0xff]   ;;  %v1642_v16 = vld [vmem:[%s2247_s1 + $0xa4] ss:$16 sps:$4 sm:$0xff]  }
  0x3c   :  { %v1644_v17 = vld [vmem:[%s2247_s1 + $0xa0] ss:$16 sps:$4 sm:$0xff]   ;;  %v1659_v18 = vld [vmem:[%s2247_s1 + $0x48] ss:$16 sps:$4 sm:$0xff]   ;;  %v1660_v19 = vld [vmem:[%s2247_s1 + $0x6c] ss:$16 sps:$4 sm:$0xff]  }
  0x3d   :  { %302 = vmatpush1.bf16.msra.mxu0 %v1632_v4  ;;  %343 = vmatpush1.bf16.msra.mxu1 %v1656_v14  ;;  %v1645_v20 = vld [vmem:[%s2247_s1 + $0xc4] ss:$16 sps:$4 sm:$0xff]   ;;  %v1647_v21 = vld [vmem:[%s2247_s1 + $0xc0] ss:$16 sps:$4 sm:$0xff]   ;;  %v1662_v22 = vld [vmem:[%s2247_s1 + $0x68] ss:$16 sps:$4 sm:$0xff]  }
  0x3e   :  { %303 = vmatprep.subr.bf16.mxu0 %v1633_v5  ;;  %344 = vmatprep.subr.bf16.mxu1 %v1657_v15  ;;  %v1663_v23 = vld [vmem:[%s2247_s1 + $0x8c] ss:$16 sps:$4 sm:$0xff]   ;;  %v1648_v24 = vld [vmem:[%s2247_s1 + $0xe4] ss:$16 sps:$4 sm:$0xff]   ;;  %v1650_v25 = vld [vmem:[%s2247_s1 + $0xe0] ss:$16 sps:$4 sm:$0xff]  }
  0x3f   :  { %v2076_v26 = vld [vmem:[%s2246_s0] sm:$0xff]  ;;  %v1665_v27 = vld [vmem:[%s2247_s1 + $0x88] ss:$16 sps:$4 sm:$0xff]   ;;  %v1666_v28 = vld [vmem:[%s2247_s1 + $0xac] ss:$16 sps:$4 sm:$0xff]   ;;  %vm1080_vm1 = vcmask 261120  }
  0x40   :  { %v1677_v29 = vld [vmem:[#allocation2 + $0x4] ss:$8 sps:$4 sm:$0xff]   ;;  %v2086_v30 = vpack.c.bf16 %v2076_v26, %v2076_v26  ;;  %v1668_v31 = vld [vmem:[%s2247_s1 + $0xa8] ss:$16 sps:$4 sm:$0xff]   ;;  %v1680_v34 = vld [vmem:[#allocation2 + $0x14] ss:$8 sps:$4 sm:$0xff]  }
  0x41   :  { %304 = vmatpush1.bf16.msra.mxu0 %v1635_v6  ;;  %345 = vmatpush1.bf16.msra.mxu1 %v1659_v18  ;;  %v1669_v32 = vld [vmem:[%s2247_s1 + $0xcc] ss:$16 sps:$4 sm:$0xff]   ;;  %v1675_v33 = vld [vmem:[#allocation2] ss:$8 sps:$4 sm:$0xff]   ;;  %v1678_v37 = vld [vmem:[#allocation2 + $0x10] ss:$8 sps:$4 sm:$0xff]  }
  0x42   :  { %305 = vmatprep.subr.bf16.mxu0 %v1636_v7  ;;  %346 = vmatprep.subr.bf16.mxu1 %v1660_v19  ;;  %v1671_v35 = vld [vmem:[%s2247_s1 + $0xc8] ss:$16 sps:$4 sm:$0xff]   ;;  %v1672_v36 = vld [vmem:[%s2247_s1 + $0xec] ss:$16 sps:$4 sm:$0xff]   ;;  %v1771_v4 = vld [vmem:[%s2251_s5 + $0x40] sm:$0xff]   ;;  %s1887_s28 = smov 56  }
  0x43   :  { %v1683_v38 = vld [vmem:[#allocation2 + $0x24] ss:$8 sps:$4 sm:$0xff]   ;;  %v1674_v39 = vld [vmem:[%s2247_s1 + $0xe8] ss:$16 sps:$4 sm:$0xff]   ;;  %v1686_v41 = vld [vmem:[#allocation2 + $0x34] ss:$8 sps:$4 sm:$0xff]   ;;  %1341 = vrot.lane.b32.xlu1 %v2076_v26, %s1887_s28 }
  0x44   :  { %v1681_v40 = vld [vmem:[#allocation2 + $0x20] ss:$8 sps:$4 sm:$0xff]   ;;  %v1684_v42 = vld [vmem:[#allocation2 + $0x30] ss:$8 sps:$4 sm:$0xff]   ;;  %v1689_v43 = vld [vmem:[#allocation2 + $0x44] ss:$8 sps:$4 sm:$0xff]  }
  0x45   :  { %306 = vmatpush1.bf16.msra.mxu0 %v1638_v8  ;;  %347 = vmatpush1.bf16.msra.mxu1 %v1662_v22  ;;  %v1687_v44 = vld [vmem:[#allocation2 + $0x40] ss:$8 sps:$4 sm:$0xff]   ;;  %v1692_v45 = vld [vmem:[#allocation2 + $0x54] ss:$8 sps:$4 sm:$0xff]   ;;  %v1690_v46 = vld [vmem:[#allocation2 + $0x50] ss:$8 sps:$4 sm:$0xff]  }
  0x46   :  { %307 = vmatprep.subr.bf16.mxu0 %v1639_v9  ;;  %348 = vmatprep.subr.bf16.mxu1 %v1663_v23  ;;  %v1695_v47 = vld [vmem:[#allocation2 + $0x64] ss:$8 sps:$4 sm:$0xff]   ;;  %v1693_v48 = vld [vmem:[#allocation2 + $0x60] ss:$8 sps:$4 sm:$0xff]   ;;  %v1698_v49 = vld [vmem:[#allocation2 + $0x74] ss:$8 sps:$4 sm:$0xff]  }
  0x47   :  { %v1696_v50 = vld [vmem:[#allocation2 + $0x70] ss:$8 sps:$4 sm:$0xff]   ;;  %v1701_v51 = vld [vmem:[#allocation2 + $0x84] ss:$8 sps:$4 sm:$0xff]   ;;  %v1699_v52 = vld [vmem:[#allocation2 + $0x80] ss:$8 sps:$4 sm:$0xff]  }
  0x48   :  { %v1704_v53 = vld [vmem:[#allocation2 + $0x94] ss:$8 sps:$4 sm:$0xff]   ;;  %v1702_v54 = vld [vmem:[#allocation2 + $0x90] ss:$8 sps:$4 sm:$0xff]   ;;  %v1707_v55 = vld [vmem:[#allocation2 + $0xa4] ss:$8 sps:$4 sm:$0xff]  }
  0x49   :  { %308 = vmatpush1.bf16.msra.mxu0 %v1641_v13  ;;  %349 = vmatpush1.bf16.msra.mxu1 %v1665_v27  ;;  %v1705_v56 = vld [vmem:[#allocation2 + $0xa0] ss:$8 sps:$4 sm:$0xff]   ;;  %v1710_v57 = vld [vmem:[#allocation2 + $0xb4] ss:$8 sps:$4 sm:$0xff]   ;;  %v1708_v58 = vld [vmem:[#allocation2 + $0xb0] ss:$8 sps:$4 sm:$0xff]  }
  0x4a   :  { %309 = vmatprep.subr.bf16.mxu0 %v1642_v16  ;;  %350 = vmatprep.subr.bf16.mxu1 %v1666_v28  ;;  %v1713_v59 = vld [vmem:[#allocation2 + $0xc4] ss:$8 sps:$4 sm:$0xff]   ;;  %v1711_v60 = vld [vmem:[#allocation2 + $0xc0] ss:$8 sps:$4 sm:$0xff]   ;;  %v1716_v61 = vld [vmem:[#allocation2 + $0xd4] ss:$8 sps:$4 sm:$0xff]   ;;  %v119_v16 = vlaneseq }
  0x4b   :  { %v1714_v62 = vld [vmem:[#allocation2 + $0xd0] ss:$8 sps:$4 sm:$0xff]   ;;  %v1719_v63 = vld [vmem:[#allocation2 + $0xe4] ss:$8 sps:$4 sm:$0xff]   ;;  %v1717_v0 = vld [vmem:[#allocation2 + $0xe0] ss:$8 sps:$4 sm:$0xff]  }
  0x4c   :  { %v1722_v1 = vld [vmem:[#allocation2 + $0xf4] ss:$8 sps:$4 sm:$0xff]   ;;  %v1720_v2 = vld [vmem:[#allocation2 + $0xf0] ss:$8 sps:$4 sm:$0xff]   ;;  %v1725_v3 = vld [vmem:[#allocation2 + $0x104] ss:$8 sps:$4 sm:$0xff]  }
  0x4d   :  { %310 = vmatpush1.bf16.msra.mxu0 %v1644_v17  ;;  %351 = vmatpush1.bf16.msra.mxu1 %v1668_v31  ;;  %v1772_v5 = vld [vmem:[%s2251_s5] sm:$0xff]   ;;  %v1773_v6 = vld [vmem:[%s2251_s5 + $0x48] sm:$0xff]   ;;  %v1775_v8 = vld [vmem:[%s2251_s5 + $0x50] sm:$0xff]   ;;  %v2141_v17 = vshrl.u32 %v119_v16, 7  ;;  %s1888_s29 = smov 54   ;;  %vm1354_vm2 = vcmask 15360  }
  0x4e   :  { %311 = vmatprep.subr.bf16.mxu0 %v1645_v20  ;;  %352 = vmatprep.subr.bf16.mxu1 %v1669_v32  ;;  %v1774_v7 = vld [vmem:[%s2251_s5 + $0x8] sm:$0xff]   ;;  %v1776_v9 = vld [vmem:[%s2251_s5 + $0x10] sm:$0xff]   ;;  %v1777_v10 = vld [vmem:[%s2251_s5 + $0x58] sm:$0xff]   ;;  %s1890_s30 = smov 3   ;;  %vm1367_vm3 = vcmask 31744   ;;  %vm1369_vm4 = vcmask 39936  }
  0x4f   :  { %v1778_v11 = vld [vmem:[%s2251_s5 + $0x18] sm:$0xff]   ;;  %v1779_v12 = vld [vmem:[%s2251_s5 + $0x60] sm:$0xff]   ;;  %v1781_v14 = vld [vmem:[%s2251_s5 + $0x68] sm:$0xff]   ;;  %v121_v18 = vsub.s32 0, %v2141_v17  ;;  %v125_v20 = vsub.s32 1, %v2141_v17  ;;  %vm1371_vm5 = vcmask 48128  }
  0x50   :  { %v1780_v13 = vld [vmem:[%s2251_s5 + $0x20] sm:$0xff]   ;;  %v1782_v15 = vld [vmem:[%s2251_s5 + $0x28] sm:$0xff]   ;;  %v1783_v16 = vld [vmem:[%s2251_s5 + $0x70] sm:$0xff]   ;;  %vm1373_vm6 = vcmask 64512  }
  0x51   :  { %312 = vmatpush1.bf16.msra.mxu0 %v1647_v21  ;;  %353 = vmatpush1.bf16.msra.mxu1 %v1671_v35  ;;  %v2147_v19 = vld [vmem:[%s2248_s2] sm:$0xf] }
  0x52   :  { %313 = vmatprep.subr.bf16.mxu0 %v1648_v24  ;;  %354 = vmatprep.subr.bf16.mxu1 %v1672_v36  ;;  %v122_v21 = vrot.slane %v2147_v19, %v121_v18  ;;  %v126_v22 = vrot.slane %v2147_v19, %v125_v20  ;;  %v1723_v35 = vld [vmem:[#allocation2 + $0x100] ss:$8 sps:$4 sm:$0xff]  }
  0x55   :  { %314 = vmatpush1.bf16.msra.mxu0 %v1650_v25  ;;  %355 = vmatpush1.bf16.msra.mxu1 %v1674_v39  ;;  %v1726_v39 = vld [vmem:[#allocation2 + $0x110] ss:$8 sps:$4 sm:$0xff]  }
  0x56   :  { %785 = vmatprep.subr.bf16.mxu0 %v1677_v29  ;;  %1516 = vmatprep.subr.bf16.mxu1 %v1771_v4  ;;  %v1759_v4 = vld [vmem:[#allocation2 + $0x1c0] ss:$8 sps:$4 sm:$0xff]  }
  0x58   :  { %332 = vmatmul.mubr.bf16.vlgmr.msra.gmra.mrb[0].mxu0 %v2086_v30  ;;  %373 = vmatmul.mubr.bf16.vlgmr.msra.gmra.mrb[0].mxu1 %v2086_v30 }
  0x59   :  { %786 = vmatpush1.bf16.msra.mxu0 %v1675_v33  ;;  %1517 = vmatpush3.bf16.msra.mxu1 %v1772_v5  ;;  %v133_v33 = vsub.s32 3, %v2141_v17  ;;  %v129_v5 = vsub.s32 2, %v2141_v17  ;;  %v1788_v17 = vld [vmem:[#allocation6 + $0x8] sm:$0xff]  }
  0x5a   :  { %787 = vmatprep.subr.bf16.mxu0 %v1680_v34  ;;  %1518 = vmatprep.subr.bf16.mxu1 %v1773_v6  ;;  %v1764_v6 = vld [vmem:[#allocation2 + $0x1d4] ss:$8 sps:$4 sm:$0xff]  }
  0x5d   :  { %788 = vmatpush1.bf16.msra.mxu0 %v1678_v37  ;;  %1519 = vmatpush3.bf16.msra.mxu1 %v1774_v7  ;;  %v1728_v37 = vld [vmem:[#allocation2 + $0x114] ss:$8 sps:$4 sm:$0xff]   ;;  %v1762_v7 = vld [vmem:[#allocation2 + $0x1d0] ss:$8 sps:$4 sm:$0xff]  }
  0x5e   :  { %789 = vmatprep.subr.bf16.mxu0 %v1683_v38  ;;  %1520 = vmatprep.subr.bf16.mxu1 %v1775_v8  ;;  %v134_v38 = vrot.slane %v2147_v19, %v133_v33  ;;  %v130_v8 = vrot.slane %v2147_v19, %v129_v5  ;;  %v1784_v19 = vld [vmem:[%s2251_s5 + $0x30] sm:$0xff]  }
  0x61   :  { %790 = vmatpush1.bf16.msra.mxu0 %v1681_v40  ;;  %1521 = vmatpush3.bf16.msra.mxu1 %v1776_v9  ;;  %v1731_v40 = vld [vmem:[#allocation2 + $0x124] ss:$8 sps:$4 sm:$0xff]  }
  0x62   :  { %791 = vmatprep.subr.bf16.mxu0 %v1686_v41  ;;  %1522 = vmatprep.subr.bf16.mxu1 %v1777_v10  ;;  %v1767_v9 = vld [vmem:[#allocation2 + $0x1e4] ss:$8 sps:$4 sm:$0xff]   ;;  %v1765_v10 = vld [vmem:[#allocation2 + $0x1e0] ss:$8 sps:$4 sm:$0xff]  }
  0x65   :  { %792 = vmatpush1.bf16.msra.mxu0 %v1684_v42  ;;  %1523 = vmatpush3.bf16.msra.mxu1 %v1778_v11 }
  0x66   :  { %793 = vmatprep.subr.bf16.mxu0 %v1689_v43  ;;  %1524 = vmatprep.subr.bf16.mxu1 %v1779_v12  ;;  %v1770_v12 = vld [vmem:[#allocation2 + $0x1f4] ss:$8 sps:$4 sm:$0xff]  }
  0x69   :  { %794 = vmatpush1.bf16.msra.mxu0 %v1687_v44  ;;  %1525 = vmatpush3.bf16.msra.mxu1 %v1780_v13  ;;  %v1768_v13 = vld [vmem:[#allocation2 + $0x1f0] ss:$8 sps:$4 sm:$0xff]  }
  0x6a   :  { %795 = vmatprep.subr.bf16.mxu0 %v1692_v45  ;;  %1526 = vmatprep.subr.bf16.mxu1 %v1781_v14  ;;  %v1729_v45 = vld [vmem:[#allocation2 + $0x120] ss:$8 sps:$4 sm:$0xff]  }
  0x6d   :  { %796 = vmatpush1.bf16.msra.mxu0 %v1690_v46  ;;  %1527 = vmatpush3.bf16.msra.mxu1 %v1782_v15 }
  0x6e   :  { %797 = vmatprep.subr.bf16.mxu0 %v1695_v47  ;;  %v1734_v47 = vld [vmem:[#allocation2 + $0x134] ss:$8 sps:$4 sm:$0xff]   ;;  %1528 = vmatprep.subr.bf16.mxu1 %v1783_v16  ;;  %v1506_v16 = vld [vmem:[%s2257_s11] ss:$0 sm:$0xff] }
  0x71   :  { %798 = vmatpush1.bf16.msra.mxu0 %v1693_v48  ;;  %1529 = vmatpush3.bf16.msra.mxu1 %v1784_v19 }
  0x72   :  { %799 = vmatprep.subr.bf16.mxu0 %v1698_v49 }
  0x75   :  { %800 = vmatpush1.bf16.msra.mxu0 %v1696_v50  ;;  %v1732_v50 = vld [vmem:[#allocation2 + $0x130] ss:$8 sps:$4 sm:$0xff]  }
  0x76   :  { %801 = vmatprep.subr.bf16.mxu0 %v1701_v51  ;;  %v1737_v51 = vld [vmem:[#allocation2 + $0x144] ss:$8 sps:$4 sm:$0xff]  }
  0x79   :  { %802 = vmatpush1.bf16.msra.mxu0 %v1699_v52  ;;  %v1735_v52 = vld [vmem:[#allocation2 + $0x140] ss:$8 sps:$4 sm:$0xff]  }
  0x7a   :  { %803 = vmatprep.subr.bf16.mxu0 %v1704_v53  ;;  %v1740_v53 = vld [vmem:[#allocation2 + $0x154] ss:$8 sps:$4 sm:$0xff]  }
  0x7d   :  { %804 = vmatpush1.bf16.msra.mxu0 %v1702_v54  ;;  %v1738_v54 = vld [vmem:[#allocation2 + $0x150] ss:$8 sps:$4 sm:$0xff]  }
  0x7e   :  { %805 = vmatprep.subr.bf16.mxu0 %v1707_v55  ;;  %v1743_v55 = vld [vmem:[#allocation2 + $0x164] ss:$8 sps:$4 sm:$0xff]  }
  0x81   :  { %806 = vmatpush1.bf16.msra.mxu0 %v1705_v56  ;;  %v1741_v56 = vld [vmem:[#allocation2 + $0x160] ss:$8 sps:$4 sm:$0xff]  }
  0x82   :  { %807 = vmatprep.subr.bf16.mxu0 %v1710_v57  ;;  %v1746_v57 = vld [vmem:[#allocation2 + $0x174] ss:$8 sps:$4 sm:$0xff]  }
  0x85   :  { %808 = vmatpush1.bf16.msra.mxu0 %v1708_v58  ;;  %v1744_v58 = vld [vmem:[#allocation2 + $0x170] ss:$8 sps:$4 sm:$0xff]  }
  0x86   :  { %809 = vmatprep.subr.bf16.mxu0 %v1713_v59  ;;  %v1749_v59 = vld [vmem:[#allocation2 + $0x184] ss:$8 sps:$4 sm:$0xff]  }
  0x89   :  { %810 = vmatpush1.bf16.msra.mxu0 %v1711_v60  ;;  %v1747_v60 = vld [vmem:[#allocation2 + $0x180] ss:$8 sps:$4 sm:$0xff]  }
  0x8a   :  { %811 = vmatprep.subr.bf16.mxu0 %v1716_v61  ;;  %v1752_v61 = vld [vmem:[#allocation2 + $0x194] ss:$8 sps:$4 sm:$0xff]  }
  0x8d   :  { %812 = vmatpush1.bf16.msra.mxu0 %v1714_v62  ;;  %v1750_v62 = vld [vmem:[#allocation2 + $0x190] ss:$8 sps:$4 sm:$0xff]  }
  0x8e   :  { %813 = vmatprep.subr.bf16.mxu0 %v1719_v63  ;;  %v1755_v63 = vld [vmem:[#allocation2 + $0x1a4] ss:$8 sps:$4 sm:$0xff]  }
  0x91   :  { %814 = vmatpush1.bf16.msra.mxu0 %v1717_v0  ;;  %v1753_v0 = vld [vmem:[#allocation2 + $0x1a0] ss:$8 sps:$4 sm:$0xff]  }
  0x92   :  { %815 = vmatprep.subr.bf16.mxu0 %v1722_v1  ;;  %v1758_v1 = vld [vmem:[#allocation2 + $0x1b4] ss:$8 sps:$4 sm:$0xff]  }
  0x95   :  { %816 = vmatpush1.bf16.msra.mxu0 %v1720_v2  ;;  %v1756_v2 = vld [vmem:[#allocation2 + $0x1b0] ss:$8 sps:$4 sm:$0xff]  }
  0x96   :  { %826 = vmatprep.subr.bf16.mxu0 %v1725_v3  ;;  %v1761_v3 = vld [vmem:[#allocation2 + $0x1c4] ss:$8 sps:$4 sm:$0xff]  }
 0x12b   :  { %v333_v23 = vpop.f32.mrb[0].mxu0  ;;  %v374_v41 = vpop.f32.mrb[0].mxu1 }
 0x12c   :  { %v334_v24 = vadd.f32 %v333_v23, %v122_v21  ;;  %v335_v25 = vpop.f32.mrb[1].mxu0  ;;  %v376_v42 = vpop.f32.mrb[1].mxu1  ;;  %v375_v11 = vadd.f32 %v374_v41, %v130_v8  ;;  %v1785_v21 = vld [vmem:[%s2251_s5 + $0x78] sm:$0xff]   ;;  %v453_v23 = vld [vmem:[%s2250_s4] sm:$0x3] }
 0x12d   :  { %v336_v27 = vadd.f32 %v335_v25, %v126_v22  ;;  %v337_v28 = vpop.f32.mrb[2].mxu0  ;;  %v377_v43 = vadd.f32 %v376_v42, %v134_v38  ;;  %v378_v44 = vpop.f32.mrb[2].mxu1  ;;  %v1786_v22 = vld [vmem:[%s2251_s5 + $0x38] sm:$0xff]   ;;  %1530 = vmatprep.subr.bf16.mxu1 %v1785_v21  ;;  %v462_v25 = vrot.slane %v453_v23, %v125_v20  ;;  %v1787_v38 = vld [vmem:[#allocation6] sm:$0xff]  }
 0x12e   :  { %v381_v29 = vmax.f32 %v334_v24, 0.0  ;;  %v338_v31 = vpop.f32.mrb[3].mxu0  ;;  %v379_v46 = vpop.f32.mrb[3].mxu1  ;;  %v383_v14 = vmax.f32 %v375_v11, 0.0  ;;  %1531 = vmatpush3.bf16.msra.mxu1 %v1786_v22  ;;  %v458_v24 = vrot.slane %v453_v23, %v121_v18  ;;  %v1477_v20 = vld [vmem:[%s2252_s6] ss:$0 sm:$0xff] }
 0x12f   :  { %v382_v32 = vmax.f32 %v336_v27, 0.0  ;;  %v384_v48 = vmax.f32 %v377_v43, 0.0  ;;  %v1789_v46 = vld [vmem:[#allocation4] sm:$0xff]  }
 0x130   :  { %v385_v36 = vpack.c.bf16 %v381_v29, %v381_v29  ;;  %v387_v15 = vpack.c.bf16 %v383_v14, %v383_v14 }
 0x131   :  { %v386_v34 = vpack.c.bf16 %v382_v32, %v382_v32  ;;  %v388_v49 = vpack.c.bf16 %v384_v48, %v384_v48  ;;  %v1790_v48 = vld [vmem:[#allocation4 + $0x8] sm:$0xff]  }
 0x133   :  { %817 = vmatprep.mubr.bf16.mxu0 %v386_v34 }
 0x134   :  { %818 = vmatmul.mubr.bf16.vlgmr.msra.gmra.mrb[4].mxu0 %v385_v36 }
 0x135   :  { %827 = vmatpush1.bf16.msra.mxu0 %v1723_v35  ;;  %858 = vmatprep.mubr.bf16.mxu0 %v388_v49  ;;  %v1791_v49 = vld [vmem:[#allocation4 + $0x10] sm:$0xff]  }
 0x136   :  { %828 = vmatprep.subr.bf16.mxu0 %v1728_v37 }
 0x139   :  { %829 = vmatpush1.bf16.msra.mxu0 %v1726_v39  ;;  %v1885_v39 = vmov 0.0  }
 0x13a   :  { %830 = vmatprep.subr.bf16.mxu0 %v1731_v40  ;;  %1559 = vmatprep.subr.bf16.mxu1 %v1885_v39 }
 0x13d   :  { %831 = vmatpush1.bf16.msra.mxu0 %v1729_v45 }
 0x13e   :  { %832 = vmatprep.subr.bf16.mxu0 %v1734_v47 }
 0x141   :  { %833 = vmatpush1.bf16.msra.mxu0 %v1732_v50  ;;  %v1792_v50 = vld [vmem:[#allocation4 + $0x18] sm:$0xff]  }
 0x142   :  { %834 = vmatprep.subr.bf16.mxu0 %v1737_v51  ;;  %v1793_v51 = vld [vmem:[#allocation4 + $0x20] sm:$0xff]  }
 0x145   :  { %835 = vmatpush1.bf16.msra.mxu0 %v1735_v52  ;;  %v1794_v52 = vld [vmem:[#allocation4 + $0x28] sm:$0xff]  }
 0x146   :  { %836 = vmatprep.subr.bf16.mxu0 %v1740_v53  ;;  %v1795_v53 = vld [vmem:[#allocation4 + $0x30] sm:$0xff]  }
 0x149   :  { %837 = vmatpush1.bf16.msra.mxu0 %v1738_v54  ;;  %v1796_v54 = vld [vmem:[#allocation4 + $0x38] sm:$0xff]  }
 0x14a   :  { %838 = vmatprep.subr.bf16.mxu0 %v1743_v55  ;;  %v1797_v55 = vld [vmem:[%s2256_s10] sm:$0xff]  }
 0x14d   :  { %839 = vmatpush1.bf16.msra.mxu0 %v1741_v56  ;;  %v1798_v56 = vld [vmem:[%s2256_s10 + $0x8] sm:$0xff]  }
 0x14e   :  { %840 = vmatprep.subr.bf16.mxu0 %v1746_v57  ;;  %v1799_v57 = vld [vmem:[%s2256_s10 + $0x10] sm:$0xff]  }
 0x151   :  { %841 = vmatpush1.bf16.msra.mxu0 %v1744_v58  ;;  %v1801_v58 = vld [vmem:[%s2256_s10 + $0x20] sm:$0xff]  }
 0x152   :  { %842 = vmatprep.subr.bf16.mxu0 %v1749_v59  ;;  %v1802_v59 = vld [vmem:[%s2256_s10 + $0x28] sm:$0xff]  }
 0x155   :  { %843 = vmatpush1.bf16.msra.mxu0 %v1747_v60  ;;  %v1803_v60 = vld [vmem:[%s2256_s10 + $0x30] sm:$0xff]  }
 0x156   :  { %844 = vmatprep.subr.bf16.mxu0 %v1752_v61  ;;  %v1804_v61 = vld [vmem:[%s2256_s10 + $0x38] sm:$0xff]  }
 0x159   :  { %845 = vmatpush1.bf16.msra.mxu0 %v1750_v62  ;;  %v1347_v62 = vmul.f32 -0.5, %v2076_v26 }
 0x15a   :  { %846 = vmatprep.subr.bf16.mxu0 %v1755_v63 }
 0x15b   :  { %v1348_v63 = vmul.f32 %v1347_v62, %v2076_v26 }
 0x15d   :  { %847 = vmatpush1.bf16.msra.mxu0 %v1753_v0  ;;  %v1349_v0 = vadd.f32 -0.41893855, %v1348_v63 }
 0x15e   :  { %848 = vmatprep.subr.bf16.mxu0 %v1758_v1  ;;  %v1333_v1 = vmul.f32 0.60653067, %v2076_v26 }
 0x15f   :  { %1351 = vrot.lane.b32.xlu0 %v1349_v0, %s1888_s29 }
 0x161   :  { %849 = vmatpush1.bf16.msra.mxu0 %v1756_v2 }
 0x162   :  { %850 = vmatprep.subr.bf16.mxu0 %v1761_v3 }
 0x163   :  { %1335 = vrot.lane.b32.xlu0 %v1333_v1, %s1888_s29 }
 0x165   :  { %851 = vmatpush1.bf16.msra.mxu0 %v1759_v4 }
 0x166   :  { %852 = vmatprep.subr.bf16.mxu0 %v1764_v6 }
 0x169   :  { %853 = vmatpush1.bf16.msra.mxu0 %v1762_v7  ;;  %v1505_v7 = vld [vmem:[%s2255_s9] ss:$0 sm:$0xff]  ;;  %s1889_s9 = smov 2  }
 0x16a   :  { %854 = vmatprep.subr.bf16.mxu0 %v1767_v9 }
 0x16d   :  { %855 = vmatpush1.bf16.msra.mxu0 %v1765_v10 }
 0x16e   :  { %856 = vmatprep.subr.bf16.mxu0 %v1770_v12 }
 0x171   :  { %857 = vmatpush1.bf16.msra.mxu0 %v1768_v13 }
 0x174   :  { %859 = vmatmul.mubr.bf16.vlgmr.msra.gmra.mrb[4].mxu0 %v387_v15 }
 0x1d1   :  { %v1352_v13 = vpop.permute.xlu0 %1351 }
 0x1d2   :  { %v1355_v26 = vsel %vm1354_vm2, %v1352_v13, 0.0 }
 0x1d3   :  { %1356 = vadd.xlane.f32.xlu1 %v1355_v26 }
 0x1d5   :  { %v1336_v21 = vpop.permute.xlu0 %1335 }
 0x247   :  { %v860_v27 = vpop.f32.mrb[4].mxu0 }
 0x248   :  { %v1607_v28 = vadd.f32 %v860_v27, %v458_v24  ;;  %v862_v29 = vpop.f32.mrb[5].mxu0 }
 0x249   :  { %v1608_v31 = vadd.f32 %v862_v29, %v462_v25  ;;  %v864_v32 = vpop.f32.mrb[6].mxu0 }
 0x24a   :  { %v867_v33 = vmax.f32 %v1607_v28, 0.0  ;;  %v865_v34 = vpop.f32.mrb[7].mxu0  ;;  %v1342_v28 = vpop.permute.xlu1 %1341 }
 0x24b   :  { %v868_v35 = vmax.f32 %v1608_v31, 0.0 }
 0x24c   :  { %v869_v37 = vpack.c.bf16 %v867_v33, %v867_v33 }
 0x24d   :  { %v870_v36 = vpack.c.bf16 %v868_v35, %v868_v35 }
 0x24f   :  { %1038 = vmatprep.mubr.bf16.mxu1 %v870_v36 }
 0x250   :  { %1039 = vmatmul.mubr.bf16.vlgmr.msra.gmra.mrb[4].mxu1 %v869_v37 }
 0x251   :  { %1560 = vmatpush3.bf16.msra.mxu1 %v1787_v38  ;;  %1563 = vmatprep.mubr.msk.bf16.mxu1 %vm1886_vm0, %v1885_v39 }
 0x252   :  { %1561 = vmatprep.subr.bf16.mxu1 %v1885_v39 }
 0x255   :  { %1562 = vmatpush3.bf16.msra.mxu1 %v1788_v17 }
 0x256   :  { %1567 = vmatprep.subr.bf16.mxu1 %v1885_v39 }
 0x260   :  { %v1357_v35 = vpop.xlane.xlu1 %1356 }
 0x323   :  { %v1532_v18 = vpop.f32.mrb[4].mxu1 }
 0x324   :  { %v1533_v40 = vpop.f32.mrb[5].mxu1 }
 0x325   :  { %v1534_v41 = vadd.f32 %v1533_v40, %v1532_v18  ;;  %v1535_v42 = vpop.f32.mrb[6].mxu1 }
 0x326   :  { %v1536_v43 = vpop.f32.mrb[7].mxu1 }
 0x327   :  { %v1041_v44 = vadd.f32 %v1534_v41, %v1477_v20 }
 0x329   :  { %v1046_v45 = vmax.f32 %v1041_v44, 0.0 }
 0x32b   :  { %v1063_v47 = vpack.c.bf16 %v1046_v45, %v1046_v45 }
 0x32d   :  { %1564 = vmatmul.mubr.msk.bf16.vlgmr.msra.gmra.mrb[8].mxu1 %vm1080_vm1, %v1063_v47 }
 0x32e   :  { %1568 = vmatpush3.bf16.msra.mxu1 %v1789_v46  ;;  %1583 = vmatprep.mubr.msk.bf16.mxu1 %vm1886_vm0, %v1885_v39 }
 0x32f   :  { %1569 = vmatprep.subr.bf16.mxu1 %v1885_v39 }
 0x332   :  { %1570 = vmatpush3.bf16.msra.mxu1 %v1790_v48 }
 0x333   :  { %1571 = vmatprep.subr.bf16.mxu1 %v1885_v39 }
 0x336   :  { %1572 = vmatpush3.bf16.msra.mxu1 %v1791_v49 }
 0x337   :  { %1573 = vmatprep.subr.bf16.mxu1 %v1885_v39 }
 0x33a   :  { %1574 = vmatpush3.bf16.msra.mxu1 %v1792_v50 }
 0x33b   :  { %1575 = vmatprep.subr.bf16.mxu1 %v1885_v39 }
 0x33e   :  { %1576 = vmatpush3.bf16.msra.mxu1 %v1793_v51 }
 0x33f   :  { %1577 = vmatprep.subr.bf16.mxu1 %v1885_v39 }
 0x342   :  { %1578 = vmatpush3.bf16.msra.mxu1 %v1794_v52 }
 0x343   :  { %1579 = vmatprep.subr.bf16.mxu1 %v1885_v39 }
 0x346   :  { %1580 = vmatpush3.bf16.msra.mxu1 %v1795_v53 }
 0x347   :  { %1581 = vmatprep.subr.bf16.mxu1 %v1885_v39 }
 0x34a   :  { %1582 = vmatpush3.bf16.msra.mxu1 %v1796_v54 }
 0x34b   :  { %1587 = vmatprep.subr.bf16.mxu1 %v1885_v39 }
 0x34d   :  { %1584 = vmatmul.mubr.bf16.vlgmr.msra.gmra.mrb[12].mxu1 %v2086_v30  ;;  %v1800_v30 = vld [vmem:[%s2256_s10 + $0x18] sm:$0xff]  }
 0x34e   :  { %1603 = vmatprep.mubr.msk.bf16.mxu1 %vm1886_vm0, %v1885_v39  ;;  %1588 = vmatpush3.bf16.msra.mxu1 %v1797_v55 }
 0x34f   :  { %1589 = vmatprep.subr.bf16.mxu1 %v1885_v39 }
 0x352   :  { %1590 = vmatpush3.bf16.msra.mxu1 %v1798_v56 }
 0x353   :  { %1591 = vmatprep.subr.bf16.mxu1 %v1885_v39 }
 0x356   :  { %1592 = vmatpush3.bf16.msra.mxu1 %v1799_v57 }
 0x357   :  { %1593 = vmatprep.subr.bf16.mxu1 %v1885_v39 }
 0x35a   :  { %1594 = vmatpush3.bf16.msra.mxu1 %v1800_v30 }
 0x35b   :  { %1595 = vmatprep.subr.bf16.mxu1 %v1885_v39 }
 0x35e   :  { %1596 = vmatpush3.bf16.msra.mxu1 %v1801_v58 }
 0x35f   :  { %1597 = vmatprep.subr.bf16.mxu1 %v1885_v39 }
 0x362   :  { %1598 = vmatpush3.bf16.msra.mxu1 %v1802_v59 }
 0x363   :  { %1599 = vmatprep.subr.bf16.mxu1 %v1885_v39 }
 0x366   :  { %1600 = vmatpush3.bf16.msra.mxu1 %v1803_v60 }
 0x367   :  { %1601 = vmatprep.subr.bf16.mxu1 %v1885_v39 }
 0x36a   :  { %1602 = vmatpush3.bf16.msra.mxu1 %v1804_v61 }
 0x400   :  { %v1118_v2 = vpop.f32.mrb[8].mxu1 }
 0x401   :  { %v1565_v3 = vpop.f32.mrb[9].mxu1 }
 0x402   :  { %v1121_v4 = vpop.f32.mrb[10].mxu1 }
 0x403   :  { %v1566_v5 = vpop.f32.mrb[11].mxu1 }
 0x420   :  { %v1206_v6 = vpop.f32.mrb[12].mxu1 }
 0x421   :  { %v1207_v8 = vadd.f32 %v1206_v6, %v1118_v2  ;;  %v1585_v9 = vpop.f32.mrb[13].mxu1 }
 0x422   :  { %v1209_v10 = vpop.f32.mrb[14].mxu1 }
 0x423   :  { %v1219_v11 = vadd.f32 %v1505_v7, %v1207_v8  ;;  %v1586_v12 = vpop.f32.mrb[15].mxu1 }
 0x425   :  { %1805 = vtanh.f32 %v1219_v11 }
 0x42f   :  { %v1806_v14 = vpop.eup %1805 }
 0x430   :  { %v1221_v15 = vpack.c.bf16 %v1806_v14, %v1806_v14 }
 0x432   :  { %1604 = vmatmul.mubr.bf16.vlgmr.msra.gmra.mrb[16].mxu1 %v1221_v15 }
 0x505   :  { %v1327_v19 = vpop.f32.mrb[16].mxu1 }
 0x506   :  { %v1328_v22 = vadd.f32 %v1506_v16, %v1327_v19  ;;  %v1605_v23 = vpop.f32.mrb[17].mxu1 }
 0x507   :  { %v1330_v24 = vpop.f32.mrb[18].mxu1 }
 0x508   :  { %v1338_v25 = vadd.f32 %v1336_v21, %v1328_v22  ;;  %v1606_v27 = vpop.f32.mrb[19].mxu1 }
 0x50a   :  { %v1339_v29 = vmul.f32 0.5, %v1338_v25 }
 0x50c   :  { %v1344_v31 = vadd.f32 %v1342_v28, %v1339_v29 }
 0x50e   :  { %v1515_v32 = vclamps-f32 %v1344_v31, 1.0 }
 0x510   :  { %1359 = vrot.lane.b32.xlu0 %v1515_v32, %s1889_s9 }
 0x514   :  { %1363 = vrot.lane.b32.xlu0 %v1328_v22, %s1890_s30 }
 0x582   :  { %v1360_v33 = vpop.permute.xlu0 %1359 }
 0x583   :  { %v1366_v34 = vsel %vm1354_vm2, %v1338_v25, %v1360_v33 }
 0x584   :  { %v1368_v36 = vsel %vm1367_vm3, %v1366_v34, %v1357_v35 }
 0x586   :  { %v1364_v37 = vpop.permute.xlu0 %1363 }
 0x587   :  { %v1370_v38 = vsel %vm1369_vm4, %v1368_v36, %v1364_v37 }
 0x588   :  { %v1372_v39 = vsel %vm1371_vm5, %v1370_v38, 0.0 }
 0x589   :  { %1374 = vst.msk [vmem:[%s2258_s12] sm:$0xff] %vm1373_vm6, %v1372_v39 }
 0x58a   :  { %1379 = vsyncpa [#allocation3], 1 }
 0x58b   :  { %1380 = vsyncpa [#allocation5], 1 }

</bundles_post_ra>
